<compile_context>
chip_gen: v7x
topology: tpu7x:2x2x1
jax: 0.10.0
libtpu: 0.0.40
codegen_flags: <defaults>
</compile_context>

<pallas_src>
import functools

import jax
import jax.numpy as jnp
from jax.experimental import pallas as pl
from jax.experimental.pallas import tpu as pltpu


# ---------------------------------------------------------------------------
# Kernels
# ---------------------------------------------------------------------------
def _ln_sub_kernel_plain(x_ref, g_ref, b_ref, o_ref):
    # x block: (tile_rows, E); gamma/beta blocks: (1, E) broadcast over rows.
    x = x_ref[...]
    inv_e = jnp.float32(1.0 / x.shape[-1])                       # static constant
    row_sum = jnp.sum(x, axis=-1, keepdims=True, dtype=jnp.float32)
    mean = (row_sum * inv_e).astype(x.dtype)                     # (tr, 1)
    o_ref[...] = (g_ref[...] * (x - mean) + b_ref[...]).astype(o_ref.dtype)


def _ln_sub_kernel_folded(x_ref, g_ref, b_ref, s_ref, o_ref, *, embed_dim):
    # x block: (tile_rows, k*E) -- k original rows folded into the lane dim so
    # stores are lane-dense.  s_ref is a (k*E, k*E) 0/1 segment matrix;
    # x @ S produces per-segment sums broadcast to every lane of the segment
    # (reduce + broadcast in a single MXU op, f32 accumulation).
    x = x_ref[...]
    inv_e = jnp.float32(1.0 / embed_dim)
    seg_sum = jnp.dot(
        x, s_ref[...],
        preferred_element_type=jnp.float32,
        precision=jax.lax.Precision.HIGHEST,
    )
    mean = (seg_sum * inv_e).astype(x.dtype)                     # (tr, k*E)
    o_ref[...] = (g_ref[...] * (x - mean) + b_ref[...]).astype(o_ref.dtype)


# ---------------------------------------------------------------------------
# Tile sizing helpers
# ---------------------------------------------------------------------------
def _vmem_budget_bytes():
    """~75% of this chip's VMEM; conservative 64 MiB (v7x) fallback."""
    cap = None
    try:
        cap = getattr(pltpu.get_tpu_info(), "vmem_capacity_bytes", None)
    except Exception:
        cap = None
    if not cap or cap < (16 << 20):
        cap = 64 << 20
    return int(cap * 0.75)


def _choose_tile_rows(rows, width, dtype_bytes, vmem_budget, max_tile_rows=1024):
    """Largest aligned row tile that (a) fits the VMEM byte budget with
    double-buffered input + output blocks, (b) leaves >= 2 grid steps when
    possible (v7x dual TensorCore), (c) prefers an even divisor of rows."""
    align = max(8, 32 // dtype_bytes)          # sublane packing: 8 f32, 16 bf16
    if rows <= align:
        return rows                            # full-extent block (always legal)

    bytes_per_row = max(1, width * dtype_bytes * 4)   # 2x-buffered in + out
    budget_rows = int(vmem_budget * 0.9) // bytes_per_row
    tile = min(max(budget_rows, align), max_tile_rows, rows)

    if rows >= 2 * align:                      # guarantee >= 2 grid steps
        half = ((rows // 2) // align) * align
        tile = min(tile, max(half, align))

    tile = max(align, (tile // align) * align)

    for cand in range(tile, align - 1, -align):    # prefer no ragged last block
        if rows % cand == 0:
            return cand
    return tile


# ---------------------------------------------------------------------------
# Wrapper
# ---------------------------------------------------------------------------
def layer_norm_substitute(x, gamma, beta, *, max_tile_rows=1024):
    """x: (B, S, E); gamma, beta: (1, 1, E) (PyTorch parameter shapes)."""
    B, S, E = x.shape
    rows = B * S
    dtype_bytes = jnp.dtype(x.dtype).itemsize
    vmem_budget = _vmem_budget_bytes()

    x2 = x.reshape(rows, E)                    # contiguous, free relayout
    g2 = gamma.reshape(1, E).astype(x.dtype)
    b2 = beta.reshape(1, E).astype(x.dtype)

    # Fold k = 128 // E rows into the lane dim when E is a small divisor of
    # 128 so the output is lane-dense (unmasked full-width stores).
    fold = 1
    if E < 128 and 128 % E == 0:
        k = 128 // E
        if rows % k == 0:
            fold = k

    if fold > 1:
        width = fold * E
        rows_eff = rows // fold
        x_in = x2.reshape(rows_eff, width)
        g_in = jnp.tile(g2, (1, fold))
        b_in = jnp.tile(b2, (1, fold))
        seg = jnp.arange(width, dtype=jnp.int32) // E
        s_mat = (seg[:, None] == seg[None, :]).astype(x.dtype)   # (kE, kE) 0/1
        kernel = functools.partial(_ln_sub_kernel_folded, embed_dim=E)
        extra_inputs = (s_mat,)
        extra_specs = [pl.BlockSpec((width, width), lambda i: (0, 0))]
    else:
        # TODO(synk): for production, E should be a multiple of 128 so stores
        # are lane-dense; other E values fall back to this (correct) path.
        width = E
        rows_eff = rows
        x_in = x2
        g_in, b_in = g2, b2
        kernel = _ln_sub_kernel_plain
        extra_inputs = ()
        extra_specs = []

    tile_rows = _choose_tile_rows(rows_eff, width, dtype_bytes, vmem_budget,
                                  max_tile_rows)
    grid = (pl.cdiv(rows_eff, tile_rows),)

    out = pl.pallas_call(
        kernel,
        out_shape=jax.ShapeDtypeStruct((rows_eff, width), x.dtype),
        grid=grid,
        in_specs=[
            pl.BlockSpec((tile_rows, width), lambda i: (i, 0)),   # x row tile
            pl.BlockSpec((1, width), lambda i: (0, 0)),           # gamma (shared)
            pl.BlockSpec((1, width), lambda i: (0, 0)),           # beta  (shared)
        ] + extra_specs,
        out_specs=pl.BlockSpec((tile_rows, width), lambda i: (i, 0)),
        compiler_params=pltpu.CompilerParams(
            dimension_semantics=("parallel",),
            vmem_limit_bytes=vmem_budget,
        ),
    )(x_in, g_in, b_in, *extra_inputs)

    return out.reshape(B, S, E)


def layer_norm_substitute_ref(x, gamma, beta):
    """Pure-JAX reference mirroring the PyTorch forward."""
    mean = jnp.mean(x, axis=-1, keepdims=True)
    return gamma * (x - mean) + beta


# ---------------------------------------------------------------------------
# Self-test
# ---------------------------------------------------------------------------
if __name__ == "__main__":
    key = jax.random.PRNGKey(0)

    # Case 1: module-consistent small shape (small E -> lane-dense folded path).
    batch, seq, embed_dim = 2, 8, 32
    k_x, k_g, k_b, key = jax.random.split(key, 4)
    x = jax.random.normal(k_x, (batch, seq, embed_dim), dtype=jnp.float32)
    gamma = 1.0 + 0.1 * jax.random.normal(k_g, (1, 1, embed_dim), dtype=jnp.float32)
    beta = 0.1 * jax.random.normal(k_b, (1, 1, embed_dim), dtype=jnp.float32)

    out = jax.block_until_ready(layer_norm_substitute(x, gamma, beta))
    ref = layer_norm_substitute_ref(x, gamma, beta)
    assert out.shape == (batch, seq, embed_dim)
    assert jnp.allclose(out, ref, atol=1e-5, rtol=1e-5), "mismatch (folded path)"

    # Case 2: lane-dense E, rows not a multiple of the tile (ragged last block,
    # multi-step grid -> exercises the plain path + output masking).
    batch2, seq2, embed_dim2 = 2, 13, 256
    k_x2, k_g2, k_b2, key = jax.random.split(key, 4)
    x2 = jax.random.normal(k_x2, (batch2, seq2, embed_dim2), dtype=jnp.float32)
    gamma2 = 1.0 + 0.1 * jax.random.normal(k_g2, (1, 1, embed_dim2), dtype=jnp.float32)
    beta2 = 0.1 * jax.random.normal(k_b2, (1, 1, embed_dim2), dtype=jnp.float32)

    out2 = jax.block_until_ready(layer_norm_substitute(x2, gamma2, beta2))
    ref2 = layer_norm_substitute_ref(x2, gamma2, beta2)
    assert out2.shape == (batch2, seq2, embed_dim2)
    assert jnp.allclose(out2, ref2, atol=1e-5, rtol=1e-5), "mismatch (plain path)"

    print("KERNEL_OK")
</pallas_src>

<mosaic_0001>
module attributes {stable_mosaic.version = 11 : i64} {
  func.func @_ln_sub_kernel_folded(%arg0: i32, %arg1: memref<4x128xf32, #tpu.memory_space<vmem>>, %arg2: memref<1x128xf32, #tpu.memory_space<vmem>>, %arg3: memref<1x128xf32, #tpu.memory_space<vmem>>, %arg4: memref<128x128xf32, #tpu.memory_space<vmem>>, %arg5: memref<4x128xf32, #tpu.memory_space<vmem>>) attributes {dimension_semantics = [#tpu.dimension_semantics<parallel>], iteration_bounds = array<i64: 1>, scalar_prefetch = 0 : i64, scratch_operands = 0 : i64, tpu.core_type = #tpu.core_type<tc>, window_params = [{transform_indices = @transform_0, window_bounds = array<i64: 4, 128>}, {pipeline_mode = #tpu.pipeline_mode<synchronous>, transform_indices = @transform_1, window_bounds = array<i64: 1, 128>}, {pipeline_mode = #tpu.pipeline_mode<synchronous>, transform_indices = @transform_2, window_bounds = array<i64: 1, 128>}, {pipeline_mode = #tpu.pipeline_mode<synchronous>, transform_indices = @transform_3, window_bounds = array<i64: 128, 128>}, {transform_indices = @transform_4, window_bounds = array<i64: 4, 128>}]} {
    %c0 = arith.constant 0 : index
    %c0_0 = arith.constant 0 : index
    %0 = vector.load %arg1[%c0, %c0_0] : memref<4x128xf32, #tpu.memory_space<vmem>>, vector<4x128xf32>
    %c0_1 = arith.constant 0 : index
    %c0_2 = arith.constant 0 : index
    %1 = vector.load %arg4[%c0_1, %c0_2] : memref<128x128xf32, #tpu.memory_space<vmem>>, vector<128x128xf32>
    %cst = arith.constant dense<0.000000e+00> : vector<4x128xf32>
    %2 = tpu.matmul %0, %1, %cst {dimension_numbers = #tpu.dot_dimension_numbers<[1], [0], [0], [1], [0, 0, 1, 1], [], []>, precision = #tpu.contract_precision<fp32>} : vector<4x128xf32>, vector<128x128xf32>, vector<4x128xf32> -> vector<4x128xf32>
    %cst_3 = arith.constant 3.125000e-02 : f32
    %3 = vector.broadcast %cst_3 : f32 to vector<4x128xf32>
    %4 = arith.mulf %2, %3 : vector<4x128xf32>
    %c0_4 = arith.constant 0 : index
    %c0_5 = arith.constant 0 : index
    %5 = vector.load %arg2[%c0_4, %c0_5] : memref<1x128xf32, #tpu.memory_space<vmem>>, vector<1x128xf32>
    %6 = arith.subf %0, %4 : vector<4x128xf32>
    %7 = vector.broadcast %5 : vector<1x128xf32> to vector<4x128xf32>
    %8 = arith.mulf %7, %6 : vector<4x128xf32>
    %c0_6 = arith.constant 0 : index
    %c0_7 = arith.constant 0 : index
    %9 = vector.load %arg3[%c0_6, %c0_7] : memref<1x128xf32, #tpu.memory_space<vmem>>, vector<1x128xf32>
    %10 = vector.broadcast %9 : vector<1x128xf32> to vector<4x128xf32>
    %11 = arith.addf %8, %10 : vector<4x128xf32>
    %c0_8 = arith.constant 0 : index
    %c0_9 = arith.constant 0 : index
    %12 = vector.load %arg5[%c0_8, %c0_9] : memref<4x128xf32, #tpu.memory_space<vmem>>, vector<4x128xf32>
    tpu.vector_store %arg5[%c0_8, %c0_9], %11 {strides = array<i32>} : memref<4x128xf32, #tpu.memory_space<vmem>>, vector<4x128xf32>,
    return
  }
  func.func @transform_0(%arg0: i32) -> (i32, i32) {
    %c0_i32 = arith.constant 0 : i32
    %c0_i32_0 = arith.constant 0 : i32
    return %arg0, %c0_i32 : i32, i32
  }
  func.func @transform_1(%arg0: i32) -> (i32, i32) {
    %c0_i32 = arith.constant 0 : i32
    %c0_i32_0 = arith.constant 0 : i32
    %c0_i32_1 = arith.constant 0 : i32
    return %c0_i32, %c0_i32_0 : i32, i32
  }
  func.func @transform_2(%arg0: i32) -> (i32, i32) {
    %c0_i32 = arith.constant 0 : i32
    %c0_i32_0 = arith.constant 0 : i32
    %c0_i32_1 = arith.constant 0 : i32
    return %c0_i32, %c0_i32_0 : i32, i32
  }
  func.func @transform_3(%arg0: i32) -> (i32, i32) {
    %c0_i32 = arith.constant 0 : i32
    %c0_i32_0 = arith.constant 0 : i32
    %c0_i32_1 = arith.constant 0 : i32
    return %c0_i32, %c0_i32_0 : i32, i32
  }
  func.func @transform_4(%arg0: i32) -> (i32, i32) {
    %c0_i32 = arith.constant 0 : i32
    %c0_i32_0 = arith.constant 0 : i32
    return %arg0, %c0_i32 : i32, i32
  }
}

</mosaic_0001>

<bundles_post_ra>
// kernel: tpu_custom_call.1
= control target key start
LH: loop header
LB: loop body
LE: loop exit
PB: predicated region body
PF: predicated region fallthrough
CT: control target
= control target key end

     0   :  { %9 = vsyncpa [#allocation3], 0  ;;  %s1618_s0 = inlined_call_operand.hbm [shape: f32[4,128], index: 0, kind: input, shape index: {}]   ;;  %s1619_s1 = inlined_call_operand.vmem [shape: f32[1,128], index: 1, kind: input, shape index: {}]   ;;  %s1620_s2 = inlined_call_operand.vmem [shape: f32[1,128], index: 2, kind: input, shape index: {}]   ;;  %s1621_s3 = inlined_call_operand.hbm [shape: f32[128,128], index: 3, kind: input, shape index: {}]   ;;  %s1622_s4 = inlined_call_operand.hbm [shape: f32[4,128], index: 4, kind: output, shape index: {}]  }
   0x1   :  { %10 = vsyncpa [#allocation6], 0 }
   0x2   :  { %11 = vsyncpa [#allocation4], 0  ;;  %s1284_s15 = smov [#allocation2]   ;;  %s1285_s17 = smov [#allocation5]  }
   0x3   :  { %s18_s16 = sshll.u32 %s1284_s15, 4  ;;  %s31_s18 = sshll.u32 %s1285_s17, 4  ;;  %s19_s16 = int_to_ptr.vmem [resolvable:$true] %s18_s16  ;;  %s1317_s18 = int_to_ptr.vmem [resolvable:$true] %s31_s18 }
   0x4   :  { %s1212_s21 = scalar_lea.hbm %s1618_s0, 64 }
   0x5   :  { %p1213_p0 = scmp.ne.s32.totalorder %s1618_s0, %s1212_s21  ;;  %p1216_p1 = scmp.lt.u32.totalorder %s1212_s21, %s1618_s0 }
   0x7   :  { %p1218_p2 = pnand %p1216_p1, %p1213_p0 }
   0x9   :  { %1221 = shalt.err (!%p1218_p2)
}
   0xa   :  { %s1222_s26 = scalar_lea.vmem %s19_s16, 64  ;;  %p1227_p4 = scmp.lt.s32.totalorder %s19_s16, %s19_s16 }
   0xb   :  { %p1223_p3 = scmp.ne.s32.totalorder %s19_s16, %s1222_s26  ;;  %p1228_p5 = scmp.lt.s32.totalorder %s1222_s26, %s1222_s26 }
   0xd   :  { %p1229_p6 = por %p1228_p5, %p1227_p4 }
   0xf   :  { %p1230_p7 = pnand %p1229_p6, %p1223_p3 }
  0x11   :  { %1233 = shalt.err (!%p1230_p7)
}
  0x12   :  { %21 = dma.hbm_to_vmem [thread:$0]  %s1618_s0, 64, %s19_s16, [#allocation3]  }
  0x13   :  { %s1234_s5 = scalar_lea.hbm %s1621_s3, 2048 }
  0x14   :  { %p1235_p8 = scmp.ne.s32.totalorder %s1621_s3, %s1234_s5  ;;  %p1238_p9 = scmp.lt.u32.totalorder %s1234_s5, %s1621_s3 }
  0x16   :  { %p1240_p10 = pnand %p1238_p9, %p1235_p8 }
  0x18   :  { %1243 = shalt.err (!%p1240_p10)
}
  0x19   :  { %s1244_s10 = scalar_lea.vmem %s1317_s18, 2048  ;;  %p1249_p12 = scmp.lt.s32.totalorder %s1317_s18, %s1317_s18 }
  0x1a   :  { %p1245_p11 = scmp.ne.s32.totalorder %s1317_s18, %s1244_s10  ;;  %p1250_p13 = scmp.lt.s32.totalorder %s1244_s10, %s1244_s10 }
  0x1c   :  { %p1251_p0 = por %p1250_p13, %p1249_p12 }
  0x1e   :  { %p1252_p1 = pnand %p1251_p0, %p1245_p11 }
  0x20   :  { %1255 = shalt.err (!%p1252_p1)
}
  0x21   :  { %s1286_s0 = smov 128   ;;  %s1287_s11 = smov 8  }
  0x22   :  { %37 = dma.hbm_to_vmem [thread:$0]  %s1621_s3, 2048, %s1317_s18, [#allocation6], %s1286_s0, %s1286_s0, %s1287_s11  }
  0x23   :  { %1278 = dma.done.wait [#allocation3], 64  }
  0x24   :  { %1279 = vsyncadd [#allocation3], 4294967232 }
  0x25   :  { %1280 = dma.done.wait [#allocation6], 2048  }
  0x26   :  { %1281 = vsyncadd [#allocation6], 4294965248  ;;  %v1288_v0 = vmov 0.0|0.0   ;;  %vm1289_vm0 = vmmov 0   ;;  %v1290_v1 = vmov 0.0   ;;  %v45_v2 = vld [vmem:[#allocation5] sm:$0xff] }
  0x27   :  { %1051 = vmatprep.subr.bf16.mxu1 %v1288_v0  ;;  %1123 = vmatprep.subr.bf16.mxu0 %v1288_v0  ;;  %v46_v3 = vld [vmem:[#allocation5 + $0x8] sm:$0xff]  ;;  %v47_v4 = vld [vmem:[#allocation5 + $0x10] sm:$0xff]  ;;  %v62_v5 = vand.u32 4294901760, %v45_v2  ;;  %v48_v7 = vld [vmem:[#allocation5 + $0x18] sm:$0xff]  ;;  %s1291_s17 = smov [#allocation7]  }
  0x28   :  { %873 = vmatprep.mubr.msk.f32.mxu1 %vm1289_vm0, %v1290_v1  ;;  %978 = vmatprep.mubr.msk.f32.mxu0 %vm1289_vm0, %v1290_v1  ;;  %v65_v6 = vand.u32 4294901760, %v46_v3  ;;  %v68_v8 = vand.u32 4294901760, %v47_v4  ;;  %v71_v9 = vand.u32 4294901760, %v48_v7  ;;  %v49_v10 = vld [vmem:[#allocation5 + $0x20] sm:$0xff]  ;;  %v50_v11 = vld [vmem:[#allocation5 + $0x28] sm:$0xff]  ;;  %v51_v16 = vld [vmem:[#allocation5 + $0x30] sm:$0xff] }
  0x29   :  { %v74_v14 = vand.u32 4294901760, %v49_v10  ;;  %v77_v15 = vand.u32 4294901760, %v50_v11  ;;  %v52_v17 = vld [vmem:[#allocation5 + $0x38] sm:$0xff]  ;;  %v80_v19 = vand.u32 4294901760, %v51_v16  ;;  %v1368_v21 = vld [vmem:[#allocation5 + $0x40] sm:$0xff]  ;;  %v1370_v22 = vld [vmem:[#allocation5 + $0x48] sm:$0xff]  ;;  %v1386_v29 = vsub.f32 %v45_v2, %v62_v5 }
  0x2a   :  { %v1354_v12 = vpack.c.bf16 %v65_v6, %v62_v5  ;;  %v1358_v13 = vpack.c.bf16 %v71_v9, %v68_v8  ;;  %v83_v20 = vand.u32 4294901760, %v52_v17  ;;  %v86_v24 = vand.u32 4294901760, %v1368_v21  ;;  %v1378_v26 = vld [vmem:[#allocation2] sm:$0xf]  ;;  %v1382_v27 = vld [vmem:[#allocation5 + $0x50] sm:$0xff]  ;;  %v1399_v35 = vld [vmem:[#allocation5 + $0x60] sm:$0xff] }
  0x2b   :  { %v1364_v18 = vpack.c.bf16 %v77_v15, %v74_v14  ;;  %v89_v25 = vand.u32 4294901760, %v1370_v22  ;;  %v1384_v28 = vld [vmem:[#allocation5 + $0x58] sm:$0xff]  ;;  %v1389_v30 = vand.u32 4294901760, %v1378_v26  ;;  %v1391_v31 = vsub.f32 %v46_v3, %v65_v6  ;;  %v1403_v36 = vld [vmem:[#allocation5 + $0x68] sm:$0xff]  ;;  %v1423_v43 = vld [vmem:[#allocation5 + $0x70] sm:$0xff]  ;;  %s727_s18 = sshll.u32 %s1291_s17, 4  ;;  %s728_s18 = int_to_ptr.vmem [resolvable:$true] %s727_s18 }
  0x2c   :  { %1053 = vmatpush3.bf16.msra.mxu1 %v1354_v12  ;;  %1125 = vmatpush3.bf16.msra.mxu0 %v1354_v12  ;;  %v1374_v23 = vpack.c.bf16 %v83_v20, %v80_v19  ;;  %v92_v33 = vand.u32 4294901760, %v1382_v27  ;;  %v95_v34 = vand.u32 4294901760, %v1384_v28  ;;  %v1405_v37 = vsub.f32 %v47_v4, %v68_v8  ;;  %v1425_v44 = vld [vmem:[#allocation5 + $0x78] sm:$0xff]  ;;  %s1256_s19 = scalar_lea.vmem %s728_s18, 64  ;;  %p1261_p3 = scmp.lt.s32.totalorder %s728_s18, %s728_s18 }
  0x2d   :  { %1054 = vmatprep.subr.bf16.mxu1 %v1288_v0  ;;  %1126 = vmatprep.subr.bf16.mxu0 %v1288_v0  ;;  %v1395_v32 = vpack.c.bf16 %v89_v25, %v86_v24  ;;  %v1407_v38 = vsub.f32 %v48_v7, %v71_v9  ;;  %v98_v39 = vand.u32 4294901760, %v1399_v35  ;;  %v1412_v40 = vsub.f32 %v1378_v26, %v1389_v30  ;;  %p1257_p2 = scmp.ne.s32.totalorder %s728_s18, %s1256_s19  ;;  %p1262_p4 = scmp.lt.s32.totalorder %s1256_s19, %s1256_s19 }
  0x2e   :  { %v1420_v41 = vpack.c.bf16 %v95_v34, %v92_v33  ;;  %v101_v42 = vand.u32 4294901760, %v1403_v36  ;;  %v155_v45 = vand.u32 4294901760, %v1386_v29  ;;  %v162_v46 = vand.u32 4294901760, %v1391_v31 }
  0x2f   :  { %v1431_v47 = vsub.f32 %v49_v10, %v74_v14  ;;  %v1433_v48 = vsub.f32 %v50_v11, %v77_v15  ;;  %v104_v49 = vand.u32 4294901760, %v1423_v43  ;;  %v107_v50 = vand.u32 4294901760, %v1425_v44  ;;  %p1263_p5 = por %p1262_p4, %p1261_p3 }
  0x30   :  { %1056 = vmatpush3.bf16.msra.mxu1 %v1358_v13  ;;  %1128 = vmatpush3.bf16.msra.mxu0 %v1358_v13  ;;  %v144_v51 = vand.u32 4294901760, %v1412_v40  ;;  %v169_v52 = vand.u32 4294901760, %v1405_v37  ;;  %v1445_v53 = vpack.c.bf16 %v101_v42, %v98_v39  ;;  %v156_v54 = vsub.f32 %v1386_v29, %v155_v45 }
  0x31   :  { %1057 = vmatprep.subr.bf16.mxu1 %v1288_v0  ;;  %1129 = vmatprep.subr.bf16.mxu0 %v1288_v0  ;;  %v163_v55 = vsub.f32 %v1391_v31, %v162_v46  ;;  %v176_v56 = vand.u32 4294901760, %v1407_v38  ;;  %v1452_v57 = vsub.f32 %v51_v16, %v80_v19  ;;  %v1454_v58 = vsub.f32 %v52_v17, %v83_v20  ;;  %p1264_p6 = pnand %p1263_p5, %p1257_p2 }
  0x32   :  { %v145_v59 = vsub.f32 %v1412_v40, %v144_v51  ;;  %v170_v60 = vsub.f32 %v1405_v37, %v169_v52  ;;  %v183_v61 = vand.u32 4294901760, %v1431_v47  ;;  %v190_v62 = vand.u32 4294901760, %v1433_v48 }
  0x33   :  { %v1466_v63 = vpack.c.bf16 %v107_v50, %v104_v49  ;;  %v157_v2 = vand.u32 4294901760, %v156_v54  ;;  %v164_v3 = vand.u32 4294901760, %v163_v55  ;;  %v177_v4 = vsub.f32 %v1407_v38, %v176_v56 }
  0x34   :  { %1059 = vmatpush3.bf16.msra.mxu1 %v1364_v18  ;;  %1131 = vmatpush3.bf16.msra.mxu0 %v1364_v18  ;;  %v1472_v5 = vsub.f32 %v1368_v21, %v86_v24  ;;  %v1475_v6 = vsub.f32 %v1370_v22, %v89_v25  ;;  %v1148_v7 = vpack.c.bf16 %v162_v46, %v155_v45  ;;  %v146_v8 = vand.u32 4294901760, %v145_v59 }
  0x35   :  { %1060 = vmatprep.subr.bf16.mxu1 %v1288_v0  ;;  %1132 = vmatprep.subr.bf16.mxu0 %v1288_v0  ;;  %v171_v9 = vand.u32 4294901760, %v170_v60  ;;  %v184_v10 = vsub.f32 %v1431_v47, %v183_v61  ;;  %v191_v11 = vsub.f32 %v1433_v48, %v190_v62  ;;  %v1076_v14 = vpack.c.bf16 %v164_v3, %v157_v2 }
  0x36   :  { %v178_v15 = vand.u32 4294901760, %v177_v4  ;;  %v197_v16 = vand.u32 4294901760, %v1452_v57  ;;  %v204_v17 = vand.u32 4294901760, %v1454_v58  ;;  %v1488_v19 = vsub.f32 %v1382_v27, %v92_v33 }
  0x37   :  { %v1493_v20 = vsub.f32 %v1384_v28, %v95_v34  ;;  %v1151_v21 = vpack.c.bf16 %v176_v56, %v169_v52  ;;  %v185_v22 = vand.u32 4294901760, %v184_v10  ;;  %v192_v24 = vand.u32 4294901760, %v191_v11 }
  0x38   :  { %1062 = vmatpush3.bf16.msra.mxu1 %v1374_v23  ;;  %1134 = vmatpush3.bf16.msra.mxu0 %v1374_v23  ;;  %v211_v25 = vand.u32 4294901760, %v1472_v5  ;;  %v1079_v45 = vpack.c.bf16 %v178_v15, %v171_v9  ;;  %v198_v46 = vsub.f32 %v1452_v57, %v197_v16  ;;  %v205_v27 = vsub.f32 %v1454_v58, %v204_v17 }
  0x39   :  { %1063 = vmatprep.subr.bf16.mxu1 %v1288_v0  ;;  %1135 = vmatprep.subr.bf16.mxu0 %v1288_v0  ;;  %v218_v33 = vand.u32 4294901760, %v1475_v6  ;;  %v1504_v28 = vsub.f32 %v1399_v35, %v98_v39  ;;  %v1509_v34 = vsub.f32 %v1403_v36, %v101_v42  ;;  %v1154_v52 = vpack.c.bf16 %v190_v62, %v183_v61 }
  0x3a   :  { %v212_v54 = vsub.f32 %v1472_v5, %v211_v25  ;;  %v225_v55 = vand.u32 4294901760, %v1488_v19  ;;  %v199_v35 = vand.u32 4294901760, %v198_v46  ;;  %v206_v39 = vand.u32 4294901760, %v205_v27 }
  0x3b   :  { %v219_v56 = vsub.f32 %v1475_v6, %v218_v33  ;;  %v232_v36 = vand.u32 4294901760, %v1493_v20  ;;  %v1524_v42 = vsub.f32 %v1423_v43, %v104_v49  ;;  %v1529_v59 = vsub.f32 %v1425_v44, %v107_v50 }
  0x3c   :  { %1065 = vmatpush3.bf16.msra.mxu1 %v1395_v32  ;;  %1137 = vmatpush3.bf16.msra.mxu0 %v1395_v32  ;;  %v1157_v60 = vpack.c.bf16 %v204_v17, %v197_v16  ;;  %v213_v61 = vand.u32 4294901760, %v212_v54  ;;  %v226_v62 = vsub.f32 %v1488_v19, %v225_v55  ;;  %v239_v2 = vand.u32 4294901760, %v1504_v28 }
  0x3d   :  { %1066 = vmatprep.subr.bf16.mxu1 %v1288_v0  ;;  %1138 = vmatprep.subr.bf16.mxu0 %v1288_v0  ;;  %v1085_v3 = vpack.c.bf16 %v206_v39, %v199_v35  ;;  %v220_v4 = vand.u32 4294901760, %v219_v56  ;;  %v246_v43 = vand.u32 4294901760, %v1509_v34  ;;  %v1160_v44 = vpack.c.bf16 %v218_v33, %v211_v25 }
  0x3e   :  { %v227_v49 = vand.u32 4294901760, %v226_v62  ;;  %v240_v50 = vsub.f32 %v1504_v28, %v239_v2  ;;  %v1163_v15 = vpack.c.bf16 %v232_v36, %v225_v55  ;;  %v1103_v54 = vpack.c.bf16 %v1407_v38, %v1405_v37 }
  0x3f   :  { %v1088_v9 = vpack.c.bf16 %v220_v4, %v213_v61  ;;  %v247_v11 = vsub.f32 %v1509_v34, %v246_v43 }
  0x40   :  { %1068 = vmatpush3.bf16.msra.mxu1 %v1420_v41  ;;  %1140 = vmatpush3.bf16.msra.mxu0 %v1420_v41  ;;  %v241_v16 = vand.u32 4294901760, %v240_v50 }
  0x41   :  { %1069 = vmatprep.subr.bf16.mxu1 %v1288_v0  ;;  %1141 = vmatprep.subr.bf16.mxu0 %v1288_v0 }
  0x44   :  { %1071 = vmatpush3.bf16.msra.mxu1 %v1445_v53  ;;  %1143 = vmatpush3.bf16.msra.mxu0 %v1445_v53 }
  0x45   :  { %1072 = vmatprep.subr.bf16.mxu1 %v1288_v0  ;;  %1144 = vmatprep.subr.bf16.mxu0 %v1288_v0 }
  0x48   :  { %1074 = vmatpush3.bf16.msra.mxu1 %v1466_v63  ;;  %1146 = vmatpush3.bf16.msra.mxu0 %v1466_v63 }
  0x49   :  { %1075 = vmatprep.subr.bf16.mxu1 %v1288_v0  ;;  %1147 = vmatprep.subr.bf16.mxu0 %v1288_v0 }
  0x4b   :  { %874 = vmatmul.mubr.f32.vlgmr.msra.gmra.mrb[0].mxu1 %v146_v8  ;;  %979 = vmatmul.mubr.f32.vlgmr.msra.gmra.mrb[0].mxu0 %v144_v51  ;;  %v1082_v51 = vpack.c.bf16 %v192_v24, %v185_v22  ;;  %v253_v8 = vand.u32 4294901760, %v1524_v42 }
  0x4c   :  { %1077 = vmatpush3.bf16.msra.mxu1 %v1076_v14  ;;  %1149 = vmatpush3.bf16.msra.mxu0 %v1148_v7  ;;  %v233_v7 = vsub.f32 %v1493_v20, %v232_v36  ;;  %v260_v14 = vand.u32 4294901760, %v1529_v59 }
  0x4d   :  { %1078 = vmatprep.subr.bf16.mxu1 %v1288_v0  ;;  %1150 = vmatprep.subr.bf16.mxu0 %v1288_v0  ;;  %v254_v22 = vsub.f32 %v1524_v42, %v253_v8 }
  0x4e   :  { %908 = vmatprep.mubr.msk.f32.mxu1 %vm1289_vm0, %v1290_v1  ;;  %1013 = vmatprep.mubr.msk.f32.mxu0 %vm1289_vm0, %v1290_v1  ;;  %v234_v10 = vand.u32 4294901760, %v233_v7  ;;  %v261_v24 = vsub.f32 %v1529_v59, %v260_v14 }
  0x4f   :  { %v255_v46 = vand.u32 4294901760, %v254_v22 }
  0x50   :  { %1080 = vmatpush3.bf16.msra.mxu1 %v1079_v45  ;;  %1152 = vmatpush3.bf16.msra.mxu0 %v1151_v21  ;;  %v1091_v17 = vpack.c.bf16 %v234_v10, %v227_v49  ;;  %v248_v21 = vand.u32 4294901760, %v247_v11  ;;  %v1166_v45 = vpack.c.bf16 %v246_v43, %v239_v2  ;;  %v262_v27 = vand.u32 4294901760, %v261_v24 }
  0x51   :  { %1081 = vmatprep.subr.bf16.mxu1 %v1288_v0  ;;  %1153 = vmatprep.subr.bf16.mxu0 %v1288_v0 }
  0x52   :  { %v1094_v25 = vpack.c.bf16 %v248_v21, %v241_v16  ;;  %v1097_v33 = vpack.c.bf16 %v262_v27, %v255_v46 }
  0x54   :  { %1083 = vmatpush3.bf16.msra.mxu1 %v1082_v51  ;;  %1155 = vmatpush3.bf16.msra.mxu0 %v1154_v52  ;;  %v1169_v51 = vpack.c.bf16 %v260_v14, %v253_v8  ;;  %v1100_v52 = vpack.c.bf16 %v1391_v31, %v1386_v29  ;;  %v1106_v29 = vpack.c.bf16 %v1433_v48, %v1431_v47  ;;  %v737_v48 = vld [vmem:[%s1619_s1] ss:$0 sm:$0xff] }
  0x55   :  { %1084 = vmatprep.subr.bf16.mxu1 %v1288_v0  ;;  %1156 = vmatprep.subr.bf16.mxu0 %v1288_v0 }
  0x58   :  { %1086 = vmatpush3.bf16.msra.mxu1 %v1085_v3  ;;  %1158 = vmatpush3.bf16.msra.mxu0 %v1157_v60 }
  0x59   :  { %1087 = vmatprep.subr.bf16.mxu1 %v1288_v0  ;;  %1159 = vmatprep.subr.bf16.mxu0 %v1288_v0 }
  0x5c   :  { %1089 = vmatpush3.bf16.msra.mxu1 %v1088_v9  ;;  %1161 = vmatpush3.bf16.msra.mxu0 %v1160_v44 }
  0x5d   :  { %1090 = vmatprep.subr.bf16.mxu1 %v1288_v0  ;;  %1162 = vmatprep.subr.bf16.mxu0 %v1288_v0 }
  0x60   :  { %1092 = vmatpush3.bf16.msra.mxu1 %v1091_v17  ;;  %1164 = vmatpush3.bf16.msra.mxu0 %v1163_v15 }
  0x61   :  { %1093 = vmatprep.subr.bf16.mxu1 %v1288_v0  ;;  %1165 = vmatprep.subr.bf16.mxu0 %v1288_v0 }
  0x64   :  { %1095 = vmatpush3.bf16.msra.mxu1 %v1094_v25  ;;  %1167 = vmatpush3.bf16.msra.mxu0 %v1166_v45 }
  0x65   :  { %1096 = vmatprep.subr.bf16.mxu1 %v1288_v0  ;;  %1168 = vmatprep.subr.bf16.mxu0 %v1288_v0 }
  0x68   :  { %1098 = vmatpush3.bf16.msra.mxu1 %v1097_v33  ;;  %1170 = vmatpush3.bf16.msra.mxu0 %v1169_v51 }
  0x69   :  { %1099 = vmatprep.subr.bf16.mxu1 %v1288_v0  ;;  %1171 = vmatprep.subr.bf16.mxu0 %v1288_v0 }
  0x6b   :  { %909 = vmatmul.mubr.f32.vlgmr.msra.gmra.mrb[0].mxu1 %v1389_v30  ;;  %1014 = vmatmul.mubr.f32.vlgmr.msra.gmra.mrb[0].mxu0 %v1389_v30 }
  0x6c   :  { %1101 = vmatpush3.bf16.msra.mxu1 %v1100_v52  ;;  %1173 = vmatpush3.bf16.msra.mxu0 %v1354_v12  ;;  %v1109_v12 = vpack.c.bf16 %v1454_v58, %v1452_v57 }
  0x6d   :  { %1102 = vmatprep.subr.bf16.mxu1 %v1288_v0  ;;  %1174 = vmatprep.subr.bf16.mxu0 %v1288_v0 }
  0x6e   :  { %943 = vmatprep.mubr.msk.f32.mxu1 %vm1289_vm0, %v1290_v1  ;;  %1048 = vmatprep.mubr.msk.f32.mxu0 %vm1289_vm0, %v1290_v1  ;;  %v1112_v1 = vpack.c.bf16 %v1475_v6, %v1472_v5 }
  0x70   :  { %1104 = vmatpush3.bf16.msra.mxu1 %v1103_v54  ;;  %1176 = vmatpush3.bf16.msra.mxu0 %v1358_v13  ;;  %v1115_v13 = vpack.c.bf16 %v1493_v20, %v1488_v19 }
  0x71   :  { %1105 = vmatprep.subr.bf16.mxu1 %v1288_v0  ;;  %1177 = vmatprep.subr.bf16.mxu0 %v1288_v0 }
  0x74   :  { %1107 = vmatpush3.bf16.msra.mxu1 %v1106_v29  ;;  %1179 = vmatpush3.bf16.msra.mxu0 %v1364_v18  ;;  %v1118_v18 = vpack.c.bf16 %v1509_v34, %v1504_v28 }
  0x75   :  { %1108 = vmatprep.subr.bf16.mxu1 %v1288_v0  ;;  %1180 = vmatprep.subr.bf16.mxu0 %v1288_v0 }
  0x78   :  { %1110 = vmatpush3.bf16.msra.mxu1 %v1109_v12  ;;  %1182 = vmatpush3.bf16.msra.mxu0 %v1374_v23  ;;  %v1121_v23 = vpack.c.bf16 %v1529_v59, %v1524_v42 }
  0x79   :  { %1111 = vmatprep.subr.bf16.mxu1 %v1288_v0  ;;  %1183 = vmatprep.subr.bf16.mxu0 %v1288_v0 }
  0x7c   :  { %1113 = vmatpush3.bf16.msra.mxu1 %v1112_v1  ;;  %1185 = vmatpush3.bf16.msra.mxu0 %v1395_v32 }
  0x7d   :  { %1114 = vmatprep.subr.bf16.mxu1 %v1288_v0  ;;  %1186 = vmatprep.subr.bf16.mxu0 %v1288_v0 }
  0x80   :  { %1116 = vmatpush3.bf16.msra.mxu1 %v1115_v13  ;;  %1188 = vmatpush3.bf16.msra.mxu0 %v1420_v41 }
  0x81   :  { %1117 = vmatprep.subr.bf16.mxu1 %v1288_v0  ;;  %1189 = vmatprep.subr.bf16.mxu0 %v1288_v0 }
  0x84   :  { %1119 = vmatpush3.bf16.msra.mxu1 %v1118_v18  ;;  %1191 = vmatpush3.bf16.msra.mxu0 %v1445_v53 }
  0x85   :  { %1120 = vmatprep.subr.bf16.mxu1 %v1288_v0  ;;  %1192 = vmatprep.subr.bf16.mxu0 %v1288_v0  ;;  %v738_v0 = vld [vmem:[%s1620_s2] ss:$0 sm:$0xff] }
  0x88   :  { %1122 = vmatpush3.bf16.msra.mxu1 %v1121_v23  ;;  %1194 = vmatpush3.bf16.msra.mxu0 %v1466_v63 }
  0x8b   :  { %944 = vmatmul.mubr.f32.vlgmr.msra.gmra.mrb[0].mxu1 %v1412_v40  ;;  %1049 = vmatmul.mubr.f32.vlgmr.msra.gmra.mrb[0].mxu0 %v1389_v30 }
 0x15e   :  { %v403_v31 = vpop.f32.mrb[0].mxu1  ;;  %v698_v32 = vpop.f32.mrb[0].mxu0 }
 0x15f   :  { %v1195_v37 = vadd.f32 %v698_v32, %v403_v31  ;;  %v945_v38 = vpop.f32.mrb[1].mxu1  ;;  %v1050_v41 = vpop.f32.mrb[1].mxu0 }
 0x161   :  { %v702_v47 = vmul.f32 0.03125, %v1195_v37 }
 0x163   :  { %v704_v53 = vsub.f32 %v1378_v26, %v702_v47 }
 0x165   :  { %v711_v40 = vmul.f32 %v737_v48, %v704_v53 }
 0x167   :  { %v719_v30 = vadd.f32 %v738_v0, %v711_v40 }
 0x169   :  { %720 = vst [vmem:[#allocation7] sm:$0xf] %v719_v30 }
 0x16a   :  { %1267 = shalt.err (!%p1264_p6)
}
 0x16b   :  { %s1268_s21 = scalar_lea.hbm %s1622_s4, 64 }
 0x16c   :  { %p1269_p7 = scmp.ne.s32.totalorder %s1622_s4, %s1268_s21  ;;  %p1272_p8 = scmp.lt.u32.totalorder %s1268_s21, %s1622_s4 }
 0x16e   :  { %p1274_p9 = pnand %p1272_p8, %p1269_p7 }
 0x170   :  { %1277 = shalt.err (!%p1274_p9)
}
 0x171   :  { %730 = dma.vmem_to_hbm [thread:$0]  %s728_s18, 64, %s1622_s4, [#allocation4]  }
 0x172   :  { %1282 = dma.done.wait [#allocation4], 64  }
 0x173   :  { %1283 = vsyncadd [#allocation4], 4294967232 }
 0x174   :  { %734 = vsyncpa [#allocation3], 1 }
 0x175   :  { %735 = vsyncpa [#allocation6], 1 }
 0x176   :  { %736 = vsyncpa [#allocation4], 1 }

</bundles_post_ra>
